<compile_context>
chip_gen: v7x
topology: tpu7x:2x2x1
jax: 0.10.0
libtpu: 0.0.40
codegen_flags: <defaults>
</compile_context>

<pallas_src>
import functools

import jax
import jax.numpy as jnp
from jax import lax
from jax.experimental import pallas as pl
from jax.experimental.pallas import tpu as pltpu


def _round_up(x: int, m: int) -> int:
    return ((x + m - 1) // m) * m


def _ntxent_kernel(x0_ref, x1t_ref, lab_col_ref, lab_row_ref, loss_ref,
                   x1n_ref, num_ref, cnt_ref, *,
                   inv_temperature, mm_dtype, actual_b):
    step = pl.program_id(0)

    # ---- one-time init: accumulators + normalized (D, B) key matrix ----
    @pl.when(step == 0)
    def _init():
        num_ref[0] = 0.0
        cnt_ref[0] = 0.0
        x1 = x1t_ref[...].astype(jnp.float32)                     # (D, B)
        ss1 = jnp.sum(x1 * x1, axis=0, keepdims=True)             # (1, B)
        # F.normalize(eps=1e-12): x / max(||x||, eps) == x * rsqrt(max(ss, eps^2))
        x1n_ref[...] = (x1 * lax.rsqrt(jnp.maximum(ss1, 1e-24))).astype(mm_dtype)

    # ---- normalize the query tile (f32); fold 1/temperature into the scale ----
    x0 = x0_ref[...].astype(jnp.float32)                          # (TQ, D)
    ss0 = jnp.sum(x0 * x0, axis=1, keepdims=True)                 # (TQ, 1)
    scale = lax.rsqrt(jnp.maximum(ss0, 1e-24)) * inv_temperature  # (TQ, 1)
    x0n = (x0 * scale).astype(mm_dtype)

    # ---- similarity logits on the MXU (RHS already (D, B): no transpose) ----
    logits = lax.dot_general(
        x0n, x1n_ref[...], (((1,), (0,)), ((), ())),
        preferred_element_type=jnp.float32)                       # (TQ, B)

    # Row-max subtraction for overflow robustness; the 1e-8*exp(-row_max) term
    # keeps the result exactly equal to (sum(exp(logits)) + 1e-8) semantics.
    row_max = jnp.max(logits, axis=1, keepdims=True)              # (TQ, 1)
    logits_exp = jnp.exp(logits - row_max)                        # (TQ, B)

    # ---- per-tile positive mask ----
    lab_col = lab_col_ref[...]                                    # (TQ, 1) int32
    lab_row = lab_row_ref[...]                                    # (1,  B) int32
    tq, b = logits.shape
    row_ids = step * tq + lax.broadcasted_iota(jnp.int32, (tq, 1), 0)  # global row
    col_idx = lax.broadcasted_iota(jnp.int32, (tq, b), 1)

    positive_mask = ((lab_col == lab_row) & (lab_col != -1)) | \
                    ((lab_col == -1) & (row_ids == col_idx))

    pos_sum = jnp.sum(jnp.where(positive_mask, logits_exp, 0.0),
                      axis=1, keepdims=True)                      # (TQ, 1)
    all_sum = jnp.sum(logits_exp, axis=1, keepdims=True) \
        + 1e-8 * jnp.exp(-row_max)                                # (TQ, 1)

    in_bounds = row_ids < actual_b                                # mask padded rows
    valid = (pos_sum > 0.0) & in_bounds
    terms = jnp.log(all_sum) - jnp.log(pos_sum)                   # == -log(pos/all)

    num_ref[0] += jnp.sum(jnp.where(valid, terms, 0.0))
    cnt_ref[0] += jnp.sum(valid.astype(jnp.float32))

    # ---- finalize ----
    @pl.when(step == pl.num_programs(0) - 1)
    def _fin():
        # NaN if no row has a positive, matching torch's .mean() over empty set.
        loss_ref[0, 0] = num_ref[0] / cnt_ref[0]


def supervised_ntxent_loss(out0, out1, labels, *,
                           temperature=0.5, label_fraction=1.0, rng=None,
                           block_q=256, matmul_dtype=None):
    """JAX/Pallas equivalent of Supervised_NTXentLoss.forward (single device)."""
    assert out0.ndim == 2 and out1.shape == out0.shape
    B, D = out0.shape
    labels = labels.astype(jnp.int32)

    if label_fraction < 1.0:
        # Random label dropping (torch.rand(...) < fraction), done as JAX glue.
        if rng is None:
            rng = jax.random.PRNGKey(0)
        keep = jax.random.uniform(rng, (B,)) < label_fraction
        labels = jnp.where(keep, labels, -1)

    # Matmul dtype defaults to the embedding dtype: bf16 embeddings -> bf16 MXU.
    mm_dtype = jnp.dtype(out0.dtype) if matmul_dtype is None else jnp.dtype(matmul_dtype)

    # Pre-transpose out1 -> (D, B): avoids an in-kernel XLU transpose.
    x1_t = out1.T

    # Query-row tiling (pad the query axis only; key axis stays full-row).
    tq = min(int(block_q), _round_up(B, 8))
    tq = _round_up(tq, 8)
    b_pad = _round_up(B, tq)

    x0 = out0
    lab_col = labels.reshape(B, 1)
    if b_pad != B:
        x0 = jnp.pad(x0, ((0, b_pad - B), (0, 0)))
        lab_col = jnp.pad(lab_col, ((0, b_pad - B), (0, 0)), constant_values=-1)
    lab_row = labels.reshape(1, B)

    grid = (b_pad // tq,)
    kernel = functools.partial(
        _ntxent_kernel,
        inv_temperature=float(1.0 / temperature),
        mm_dtype=mm_dtype,
        actual_b=B)

    loss = pl.pallas_call(
        kernel,
        grid=grid,
        out_shape=jax.ShapeDtypeStruct((1, 1), jnp.float32),
        in_specs=[
            pl.BlockSpec((tq, D), lambda i: (i, 0)),   # out0 query tile
            pl.BlockSpec((D, B), lambda i: (0, 0)),    # out1^T, VMEM-resident
            pl.BlockSpec((tq, 1), lambda i: (i, 0)),   # labels column tile
            pl.BlockSpec((1, B), lambda i: (0, 0)),    # labels row, resident
        ],
        out_specs=pl.BlockSpec((1, 1), lambda i: (0, 0),
                               memory_space=pltpu.MemorySpace.SMEM),
        scratch_shapes=[
            pltpu.VMEM((D, B), mm_dtype),              # normalized out1^T
            pltpu.SMEM((1,), jnp.float32),             # num accumulator
            pltpu.SMEM((1,), jnp.float32),             # cnt accumulator
        ],
        compiler_params=pltpu.CompilerParams(
            dimension_semantics=("arbitrary",),
            vmem_limit_bytes=48 * 1024 * 1024),
    )(x0, x1_t, lab_col, lab_row)
    return loss[0, 0]


def _reference(out0, out1, labels, temperature=0.5):
    """Pure-JAX reference mirroring the PyTorch forward (label_fraction=1)."""
    def norm(x):
        return x / jnp.maximum(jnp.linalg.norm(x, axis=1, keepdims=True), 1e-12)
    x0, x1 = norm(out0), norm(out1)
    logits = x0 @ x1.T / temperature
    logits_exp = jnp.exp(logits)
    lab = labels
    pos_lab = (lab[:, None] == lab[None, :]) & (lab[:, None] != -1)
    eye = jnp.eye(logits.shape[0], dtype=bool)
    pos_unlab = (lab[:, None] == -1) & eye
    pos_mask = pos_lab | pos_unlab
    pos_sum = jnp.sum(logits_exp * pos_mask, axis=1)
    all_sum = jnp.sum(logits_exp, axis=1) + 1e-8
    valid = pos_sum > 0
    terms = -jnp.log(pos_sum / all_sum)
    return jnp.sum(jnp.where(valid, terms, 0.0)) / jnp.sum(valid)


if __name__ == "__main__":
    key = jax.random.PRNGKey(0)
    k0, k1, k2, k3, k4, k5 = jax.random.split(key, 6)

    # --- test 1: f32 inputs (exact check) ---
    B, D = 8, 32
    out0 = jax.random.normal(k0, (B, D), dtype=jnp.float32)
    out1 = jax.random.normal(k1, (B, D), dtype=jnp.float32)
    labels = jax.random.randint(k2, (B,), 0, 3, dtype=jnp.int32)
    labels = labels.at[0].set(-1)   # exercise the unlabeled / identity path

    loss = supervised_ntxent_loss(out0, out1, labels, temperature=0.5)
    jax.block_until_ready(loss)
    ref = _reference(out0, out1, labels, temperature=0.5)
    assert jnp.allclose(loss, ref, atol=1e-5, rtol=1e-5), (loss, ref)

    # --- test 2: bf16 inputs (native-dtype DMA + bf16 MXU matmul path) ---
    out0_bf = out0.astype(jnp.bfloat16)
    out1_bf = out1.astype(jnp.bfloat16)
    loss_bf = supervised_ntxent_loss(out0_bf, out1_bf, labels, temperature=0.5)
    jax.block_until_ready(loss_bf)
    ref_bf = _reference(out0_bf.astype(jnp.float32), out1_bf.astype(jnp.float32),
                        labels, temperature=0.5)
    assert jnp.allclose(loss_bf, ref_bf, atol=5e-2, rtol=5e-2), (loss_bf, ref_bf)

    # --- test 3: multi-tile grid + query-row padding path ---
    B2, D2 = 20, 32
    out0b = jax.random.normal(k3, (B2, D2), dtype=jnp.float32)
    out1b = jax.random.normal(k4, (B2, D2), dtype=jnp.float32)
    labels2 = jax.random.randint(k5, (B2,), 0, 4, dtype=jnp.int32)
    labels2 = labels2.at[1].set(-1)
    loss2 = supervised_ntxent_loss(out0b, out1b, labels2, temperature=0.5,
                                   block_q=8)   # 3 tiles, 4 padded query rows
    jax.block_until_ready(loss2)
    ref2 = _reference(out0b, out1b, labels2, temperature=0.5)
    assert jnp.allclose(loss2, ref2, atol=1e-5, rtol=1e-5), (loss2, ref2)

    print("KERNEL_OK")
</pallas_src>

<mosaic_0001>
module attributes {stable_mosaic.version = 11 : i64} {
  func.func @_ntxent_kernel(%arg0: i32, %arg1: memref<8x32xf32, #tpu.memory_space<vmem>>, %arg2: memref<32x8xf32, #tpu.memory_space<vmem>>, %arg3: memref<8x1xi32, #tpu.memory_space<vmem>>, %arg4: memref<1x8xi32, #tpu.memory_space<vmem>>, %arg5: memref<1x1xf32, #tpu.memory_space<smem>>, %arg6: memref<32x8xf32, #tpu.memory_space<vmem>>, %arg7: memref<1xf32, #tpu.memory_space<smem>>, %arg8: memref<1xf32, #tpu.memory_space<smem>>) attributes {dimension_semantics = [#tpu.dimension_semantics<arbitrary>], iteration_bounds = array<i64: 1>, scalar_prefetch = 0 : i64, scratch_operands = 3 : i64, tpu.core_type = #tpu.core_type<tc>, window_params = [{transform_indices = @transform_0, window_bounds = array<i64: 8, 32>}, {pipeline_mode = #tpu.pipeline_mode<synchronous>, transform_indices = @transform_1, window_bounds = array<i64: 32, 8>}, {transform_indices = @transform_2, window_bounds = array<i64: 8, 1>}, {pipeline_mode = #tpu.pipeline_mode<synchronous>, transform_indices = @transform_3, window_bounds = array<i64: 1, 8>}, {transform_indices = @transform_4, window_bounds = array<i64: 1, 1>}]} {
    %c0_i32 = arith.constant 0 : i32
    %0 = arith.cmpi eq, %arg0, %c0_i32 : i32
    %1 = arith.extui %0 : i1 to i32
    %c0_i32_0 = arith.constant 0 : i32
    %2 = arith.cmpi ne, %1, %c0_i32_0 : i32
    scf.if %2 {
      %cst_29 = arith.constant 0.000000e+00 : f32
      %c0_30 = arith.constant 0 : index
      %83 = memref.load %arg7[%c0_30] : memref<1xf32, #tpu.memory_space<smem>>
      memref.store %cst_29, %arg7[%c0_30] : memref<1xf32, #tpu.memory_space<smem>>
      %cst_31 = arith.constant 0.000000e+00 : f32
      %c0_32 = arith.constant 0 : index
      %84 = memref.load %arg8[%c0_32] : memref<1xf32, #tpu.memory_space<smem>>
      memref.store %cst_31, %arg8[%c0_32] : memref<1xf32, #tpu.memory_space<smem>>
      %c0_33 = arith.constant 0 : index
      %c0_34 = arith.constant 0 : index
      %85 = vector.load %arg2[%c0_33, %c0_34] : memref<32x8xf32, #tpu.memory_space<vmem>>, vector<32x8xf32>
      %86 = arith.mulf %85, %85 : vector<32x8xf32>
      %cst_35 = arith.constant dense<0.000000e+00> : vector<8xf32>
      %87 = vector.multi_reduction <add>, %86, %cst_35 [0] : vector<32x8xf32> to vector<8xf32>
      %88 = vector.shape_cast %87 : vector<8xf32> to vector<1x8xf32>
      %cst_36 = arith.constant 1.000000e-24 : f32
      %89 = vector.broadcast %cst_36 : f32 to vector<1x8xf32>
      %90 = arith.maximumf %88, %89 : vector<1x8xf32>
      %91 = math.rsqrt %90 : vector<1x8xf32>
      %92 = vector.broadcast %91 : vector<1x8xf32> to vector<32x8xf32>
      %93 = arith.mulf %85, %92 : vector<32x8xf32>
      %c0_37 = arith.constant 0 : index
      %c0_38 = arith.constant 0 : index
      %94 = vector.load %arg6[%c0_37, %c0_38] : memref<32x8xf32, #tpu.memory_space<vmem>>, vector<32x8xf32>
      tpu.vector_store %arg6[%c0_37, %c0_38], %93 {strides = array<i32>} : memref<32x8xf32, #tpu.memory_space<vmem>>, vector<32x8xf32>,
    } else {
    }
    %c0 = arith.constant 0 : index
    %c0_1 = arith.constant 0 : index
    %3 = vector.load %arg1[%c0, %c0_1] : memref<8x32xf32, #tpu.memory_space<vmem>>, vector<8x32xf32>
    %4 = arith.mulf %3, %3 : vector<8x32xf32>
    %cst = arith.constant dense<0.000000e+00> : vector<8xf32>
    %5 = vector.multi_reduction <add>, %4, %cst [1] : vector<8x32xf32> to vector<8xf32>
    %6 = vector.shape_cast %5 : vector<8xf32> to vector<8x1xf32>
    %cst_2 = arith.constant 1.000000e-24 : f32
    %7 = vector.broadcast %cst_2 : f32 to vector<8x1xf32>
    %8 = arith.maximumf %6, %7 : vector<8x1xf32>
    %9 = math.rsqrt %8 : vector<8x1xf32>
    %cst_3 = arith.constant 2.000000e+00 : f32
    %10 = vector.broadcast %cst_3 : f32 to vector<8x1xf32>
    %11 = arith.mulf %9, %10 : vector<8x1xf32>
    %12 = vector.broadcast %11 : vector<8x1xf32> to vector<8x32xf32>
    %13 = arith.mulf %3, %12 : vector<8x32xf32>
    %c0_4 = arith.constant 0 : index
    %c0_5 = arith.constant 0 : index
    %14 = vector.load %arg6[%c0_4, %c0_5] : memref<32x8xf32, #tpu.memory_space<vmem>>, vector<32x8xf32>
    %cst_6 = arith.constant dense<0.000000e+00> : vector<8x8xf32>
    %15 = tpu.matmul %13, %14, %cst_6 {dimension_numbers = #tpu.dot_dimension_numbers<[1], [0], [0], [1], [0, 0, 1, 1], [], []>} : vector<8x32xf32>, vector<32x8xf32>, vector<8x8xf32> -> vector<8x8xf32>
    %cst_7 = arith.constant dense<0xFF800000> : vector<8xf32>
    %16 = vector.multi_reduction <maximumf>, %15, %cst_7 [1] : vector<8x8xf32> to vector<8xf32>
    %17 = vector.shape_cast %16 : vector<8xf32> to vector<8x1xf32>
    %18 = vector.broadcast %17 : vector<8x1xf32> to vector<8x8xf32>
    %19 = arith.subf %15, %18 : vector<8x8xf32>
    %20 = math.exp %19 : vector<8x8xf32>
    %c0_8 = arith.constant 0 : index
    %c0_9 = arith.constant 0 : index
    %21 = vector.load %arg3[%c0_8, %c0_9] : memref<8x1xi32, #tpu.memory_space<vmem>>, vector<8x1xi32>
    %c0_10 = arith.constant 0 : index
    %c0_11 = arith.constant 0 : index
    %22 = vector.load %arg4[%c0_10, %c0_11] : memref<1x8xi32, #tpu.memory_space<vmem>>, vector<1x8xi32>
    %c8_i32 = arith.constant 8 : i32
    %23 = arith.muli %arg0, %c8_i32 : i32
    %24 = tpu.iota {dimensions = array<i32: 0>} : vector<8x1xi32>
    %25 = vector.broadcast %23 : i32 to vector<8x1xi32>
    %26 = arith.addi %25, %24 : vector<8x1xi32>
    %27 = tpu.iota {dimensions = array<i32: 1>} : vector<8x8xi32>
    %28 = vector.broadcast %21 : vector<8x1xi32> to vector<8x8xi32>
    %29 = vector.broadcast %22 : vector<1x8xi32> to vector<8x8xi32>
    %30 = arith.cmpi eq, %28, %29 : vector<8x8xi32>
    %c-1_i32 = arith.constant -1 : i32
    %31 = vector.broadcast %c-1_i32 : i32 to vector<8x1xi32>
    %32 = arith.cmpi ne, %21, %31 : vector<8x1xi32>
    %33 = vector.broadcast %32 : vector<8x1xi1> to vector<8x8xi1>
    %34 = arith.andi %30, %33 : vector<8x8xi1>
    %c-1_i32_12 = arith.constant -1 : i32
    %35 = vector.broadcast %c-1_i32_12 : i32 to vector<8x1xi32>
    %36 = arith.cmpi eq, %21, %35 : vector<8x1xi32>
    %37 = vector.broadcast %26 : vector<8x1xi32> to vector<8x8xi32>
    %38 = arith.cmpi eq, %37, %27 : vector<8x8xi32>
    %39 = vector.broadcast %36 : vector<8x1xi1> to vector<8x8xi1>
    %40 = arith.andi %39, %38 : vector<8x8xi1>
    %41 = arith.ori %34, %40 : vector<8x8xi1>
    %cst_13 = arith.constant 0.000000e+00 : f32
    %42 = vector.broadcast %cst_13 : f32 to vector<8x8xf32>
    %43 = arith.select %41, %20, %42 : vector<8x8xi1>, vector<8x8xf32>
    %cst_14 = arith.constant dense<0.000000e+00> : vector<8xf32>
    %44 = vector.multi_reduction <add>, %43, %cst_14 [1] : vector<8x8xf32> to vector<8xf32>
    %45 = vector.shape_cast %44 : vector<8xf32> to vector<8x1xf32>
    %cst_15 = arith.constant dense<0.000000e+00> : vector<8xf32>
    %46 = vector.multi_reduction <add>, %20, %cst_15 [1] : vector<8x8xf32> to vector<8xf32>
    %47 = vector.shape_cast %46 : vector<8xf32> to vector<8x1xf32>
    %cst_16 = arith.constant 0.000000e+00 : f32
    %48 = vector.broadcast %cst_16 : f32 to vector<8x1xf32>
    %49 = arith.subf %48, %17 : vector<8x1xf32>
    %50 = math.exp %49 : vector<8x1xf32>
    %cst_17 = arith.constant 9.99999993E-9 : f32
    %51 = vector.broadcast %cst_17 : f32 to vector<8x1xf32>
    %52 = arith.mulf %51, %50 : vector<8x1xf32>
    %53 = arith.addf %47, %52 : vector<8x1xf32>
    %c8_i32_18 = arith.constant 8 : i32
    %54 = vector.broadcast %c8_i32_18 : i32 to vector<8x1xi32>
    %55 = arith.cmpi slt, %26, %54 : vector<8x1xi32>
    %cst_19 = arith.constant 0.000000e+00 : f32
    %56 = vector.broadcast %cst_19 : f32 to vector<8x1xf32>
    %57 = arith.cmpf ogt, %45, %56 : vector<8x1xf32>
    %58 = arith.andi %57, %55 : vector<8x1xi1>
    %59 = math.log %53 : vector<8x1xf32>
    %60 = math.log %45 : vector<8x1xf32>
    %61 = arith.subf %59, %60 : vector<8x1xf32>
    %c0_20 = arith.constant 0 : index
    %62 = memref.load %arg7[%c0_20] : memref<1xf32, #tpu.memory_space<smem>>
    %cst_21 = arith.constant 0.000000e+00 : f32
    %63 = vector.broadcast %cst_21 : f32 to vector<8x1xf32>
    %64 = arith.select %58, %61, %63 : vector<8x1xi1>, vector<8x1xf32>
    %65 = vector.shape_cast %64 : vector<8x1xf32> to vector<1x8x1xf32>
    %cst_22 = arith.constant dense<0.000000e+00> : vector<1xf32>
    %66 = vector.multi_reduction <add>, %65, %cst_22 [1, 2] : vector<1x8x1xf32> to vector<1xf32>
    %67 = vector.shape_cast %66 : vector<1xf32> to vector<1x1x1xf32>
    %68 = vector.extract %67[0, 0, 0] : f32 from vector<1x1x1xf32>
    %69 = arith.addf %62, %68 : f32
    %c0_23 = arith.constant 0 : index
    %70 = memref.load %arg7[%c0_23] : memref<1xf32, #tpu.memory_space<smem>>
    memref.store %69, %arg7[%c0_23] : memref<1xf32, #tpu.memory_space<smem>>
    %c0_24 = arith.constant 0 : index
    %71 = memref.load %arg8[%c0_24] : memref<1xf32, #tpu.memory_space<smem>>
    %72 = arith.extui %58 : vector<8x1xi1> to vector<8x1xi32>
    %73 = arith.sitofp %72 : vector<8x1xi32> to vector<8x1xf32>
    %74 = vector.shape_cast %73 : vector<8x1xf32> to vector<1x8x1xf32>
    %cst_25 = arith.constant dense<0.000000e+00> : vector<1xf32>
    %75 = vector.multi_reduction <add>, %74, %cst_25 [1, 2] : vector<1x8x1xf32> to vector<1xf32>
    %76 = vector.shape_cast %75 : vector<1xf32> to vector<1x1x1xf32>
    %77 = vector.extract %76[0, 0, 0] : f32 from vector<1x1x1xf32>
    %78 = arith.addf %71, %77 : f32
    %c0_26 = arith.constant 0 : index
    %79 = memref.load %arg8[%c0_26] : memref<1xf32, #tpu.memory_space<smem>>
    memref.store %78, %arg8[%c0_26] : memref<1xf32, #tpu.memory_space<smem>>
    %c0_i32_27 = arith.constant 0 : i32
    %80 = arith.cmpi eq, %arg0, %c0_i32_27 : i32
    %81 = arith.extui %80 : i1 to i32
    %c0_i32_28 = arith.constant 0 : i32
    %82 = arith.cmpi ne, %81, %c0_i32_28 : i32
    scf.if %82 {
      %c0_29 = arith.constant 0 : index
      %83 = memref.load %arg7[%c0_29] : memref<1xf32, #tpu.memory_space<smem>>
      %c0_30 = arith.constant 0 : index
      %84 = memref.load %arg8[%c0_30] : memref<1xf32, #tpu.memory_space<smem>>
      %85 = arith.divf %83, %84 : f32
      %c0_31 = arith.constant 0 : index
      %c0_32 = arith.constant 0 : index
      %86 = memref.load %arg5[%c0_31, %c0_32] : memref<1x1xf32, #tpu.memory_space<smem>>
      memref.store %85, %arg5[%c0_31, %c0_32] : memref<1x1xf32, #tpu.memory_space<smem>>
    } else {
    }
    return
  }
  func.func @transform_0(%arg0: i32) -> (i32, i32) {
    %c0_i32 = arith.constant 0 : i32
    %c0_i32_0 = arith.constant 0 : i32
    return %arg0, %c0_i32 : i32, i32
  }
  func.func @transform_1(%arg0: i32) -> (i32, i32) {
    %c0_i32 = arith.constant 0 : i32
    %c0_i32_0 = arith.constant 0 : i32
    %c0_i32_1 = arith.constant 0 : i32
    return %c0_i32, %c0_i32_0 : i32, i32
  }
  func.func @transform_2(%arg0: i32) -> (i32, i32) {
    %c0_i32 = arith.constant 0 : i32
    %c0_i32_0 = arith.constant 0 : i32
    return %arg0, %c0_i32 : i32, i32
  }
  func.func @transform_3(%arg0: i32) -> (i32, i32) {
    %c0_i32 = arith.constant 0 : i32
    %c0_i32_0 = arith.constant 0 : i32
    %c0_i32_1 = arith.constant 0 : i32
    return %c0_i32, %c0_i32_0 : i32, i32
  }
  func.func @transform_4(%arg0: i32) -> (i32, i32) {
    %c0_i32 = arith.constant 0 : i32
    %c0_i32_0 = arith.constant 0 : i32
    %c0_i32_1 = arith.constant 0 : i32
    return %c0_i32, %c0_i32_0 : i32, i32
  }
}

</mosaic_0001>

<bundles_post_ra>
// kernel: tpu_custom_call.1
= control target key start
LH: loop header
LB: loop body
LE: loop exit
PB: predicated region body
PF: predicated region fallthrough
CT: control target
= control target key end

     0   :  { %vm60_vm0 = vcmask 261120   ;;  %vm34_vm1 = vcmask 64512   ;;  %s403_s0 = inlined_call_operand.vmem [shape: f32[8,32], index: 0, kind: input, shape index: {}]   ;;  %s404_s1 = inlined_call_operand.vmem [shape: f32[32,8], index: 1, kind: input, shape index: {}]   ;;  %s405_s2 = inlined_call_operand.vmem [shape: s32[8,1], index: 2, kind: input, shape index: {}]   ;;  %s406_s3 = inlined_call_operand.vmem [shape: s32[1,8], index: 3, kind: input, shape index: {}]   ;;  %s407_s4 = inlined_call_operand.hbm [shape: f32[1,1], index: 4, kind: output, shape index: {}]  }
   0x1   :  { %v58_v0 = vld [vmem:[%s403_s0] sm:$0xff]  ;;  %v27_v2 = vld [vmem:[%s404_s1 + $0x8] sm:$0xff]  ;;  %v28_v4 = vld [vmem:[%s404_s1 + $0x10] sm:$0xff] }
   0x2   :  { %v26_v1 = vld [vmem:[%s404_s1] sm:$0xff]  ;;  %v59_v3 = vmul.f32 %v58_v0, %v58_v0  ;;  %v29_v5 = vld [vmem:[%s404_s1 + $0x18] sm:$0xff]  ;;  %v31_v7 = vmul.f32 %v27_v2, %v27_v2 }
   0x3   :  { %v30_v6 = vmul.f32 %v26_v1, %v26_v1 }
   0x4   :  { %9 = vsyncpa [#allocation6], 0  ;;  %v32_v8 = vmul.f32 %v28_v4, %v28_v4  ;;  %v33_v9 = vmul.f32 %v29_v5, %v29_v5  ;;  %v61_v10 = vsel %vm60_vm0, %v59_v3, 0.0  ;;  %v36_v12 = vsel %vm34_vm1, %v31_v7, 0.0  ;;  %v152_v43 = vld [vmem:[%s405_s2] sm:$0xff]  ;;  %s313_s5 = scalar_lea.hbm %s407_s4, 16 }
   0x5   :  { %v35_v11 = vsel %vm34_vm1, %v30_v6, 0.0  ;;  %62 = vadd.xlane.f32.xlu0 %v61_v10  ;;  %v325_v25 = vmov 0.0|0.0   ;;  %vm326_vm2 = vmmov 0   ;;  %v327_v27 = vmov 0.0   ;;  %v262_v55 = vld [vmem:[%s406_s3] ss:$0 sm:$0xff]  ;;  %p314_p0 = scmp.ne.s32.totalorder %s407_s4, %s313_s5  ;;  %p317_p1 = scmp.lt.u32.totalorder %s313_s5, %s407_s4 }
   0x6   :  { %v37_v13 = vadd.f32 %v36_v12, %v35_v11  ;;  %v38_v14 = vsel %vm34_vm1, %v32_v8, 0.0  ;;  %v40_v15 = vsel %vm34_vm1, %v33_v9, 0.0  ;;  %280 = vmatprep.subr.bf16.mxu0 %v325_v25  ;;  %277 = vmatprep.mubr.msk.f32.mxu0 %vm326_vm2, %v327_v27  ;;  %v328_v44 = vmov 0  }
   0x7   :  { %297 = vset.pattern.permute.xlu1 %v328_v44  ;;  %298 = vset.pattern.permute.xlu0 %v328_v44  ;;  %vm169_vm3 = vcmp.ne.s32.totalorder %v152_v43, 4294967295  ;;  %vm176_vm4 = vcmp.eq.s32.totalorder %v152_v43, 4294967295  ;;  %v155_v52 = vlaneseq  ;;  %vm207_vm12 = vcmask 7168   ;;  %p319_p2 = pnand %p317_p1, %p314_p0 }
   0x8   :  { %v39_v16 = vadd.f32 %v38_v14, %v37_v13  ;;  %162 = vperm.xlu1 %297, %v152_v43   ;;  %v178_v45 = vsel %vm176_vm4, 1, %v328_v44  ;;  %v170_v46 = vsel %vm169_vm3, 1, %v328_v44 }
   0x9   :  { %v156_v57 = vshrl.u32 %v155_v52, 7  ;;  %v160_v58 = vand.u32 127, %v155_v52 }
   0xa   :  { %v41_v17 = vadd.f32 %v40_v15, %v39_v16 }
   0xb   :  { %vm177_vm7 = vcmp.eq.s32.totalorder %v156_v57, %v160_v58 }
   0xc   :  { %v42_v18 = vrot.slane %v41_v17, 4  ;;  %172 = vperm.xlu1 %297, %v170_v46  }
   0xe   :  { %v43_v19 = vadd.f32 %v42_v18, %v41_v17 }
  0x10   :  { %v44_v20 = vrot.slane %v43_v19, 2 }
  0x12   :  { %v45_v21 = vadd.f32 %v44_v20, %v43_v19 }
  0x14   :  { %v46_v22 = vrot.slane %v45_v21, 1 }
  0x16   :  { %v47_v23 = vadd.f32 %v46_v22, %v45_v21 }
  0x18   :  { %v48_v24 = vmax.f32 %v47_v23, 1e-24 }
  0x1a   :  { %299 = vrsqrt.f32 %v48_v24 }
  0x24   :  { %v300_v26 = vpop.eup %299 }
  0x25   :  { %v50_v28 = vmul.f32 %v300_v26, %v26_v1  ;;  %v51_v29 = vmul.f32 %v300_v26, %v27_v2  ;;  %v52_v30 = vmul.f32 %v300_v26, %v28_v4  ;;  %v53_v31 = vmul.f32 %v300_v26, %v29_v5 }
  0x27   :  { %54 = vst.msk [vmem:[#allocation2] sm:$0xff] %vm34_vm1, %v50_v28  ;;  %55 = vst.msk [vmem:[#allocation2 + $0x8] sm:$0xff] %vm34_vm1, %v51_v29 }
  0x28   :  { %56 = vst.msk [vmem:[#allocation2 + $0x10] sm:$0xff] %vm34_vm1, %v52_v30  ;;  %57 = vst.msk [vmem:[#allocation2 + $0x18] sm:$0xff] %vm34_vm1, %v53_v31 }
  0x2e   :  { %v68_v32 = vld [vmem:[#allocation2] sm:$0xff]  ;;  %v69_v33 = vld [vmem:[#allocation2 + $0x8] sm:$0xff] }
  0x2f   :  { %v70_v34 = vld [vmem:[#allocation2 + $0x10] sm:$0xff]  ;;  %v281_v35 = vpack.c.bf16 %v69_v33, %v68_v32  ;;  %v71_v36 = vld [vmem:[#allocation2 + $0x18] sm:$0xff] }
  0x30   :  { %v284_v37 = vpack.c.bf16 %v71_v36, %v70_v34 }
  0x31   :  { %282 = vmatpush3.bf16.msra.mxu0 %v281_v35 }
  0x32   :  { %283 = vmatprep.subr.bf16.mxu0 %v325_v25 }
  0x35   :  { %285 = vmatpush3.bf16.msra.mxu0 %v284_v37 }
  0x87   :  { %v163_v50 = vpop.permute.xlu1 %162 }
  0x88   :  { %vm168_vm5 = vcmp.eq.s32.totalorder %v163_v50, %v262_v55 }
  0x8b   :  { %v173_v56 = vpop.permute.xlu1 %172 }
  0x8c   :  { %vm174_vm6 = vcmp.eq.s32.totalorder %v173_v56, 1 }
  0x8d   :  { %vm175_vm9 = vmand %vm168_vm5, %vm174_vm6 }
  0x92   :  { %v63_v38 = vpop.xlane.xlu0 %62 }
  0x93   :  { %v64_v39 = vmax.f32 %v63_v38, 1e-24 }
  0x95   :  { %301 = vrsqrt.f32 %v64_v39 }
  0x9f   :  { %v302_v40 = vpop.eup %301 }
  0xa0   :  { %v66_v41 = vmul.f32 2.0, %v302_v40 }
  0xa2   :  { %v67_v42 = vmul.f32 %v66_v41, %v58_v0 }
  0xa4   :  { %278 = vmatmul.mubr.msk.f32.vlgmr.msra.gmra.mrb[0].mxu0 %vm60_vm0, %v67_v42 }
 0x177   :  { %v141_v47 = vpop.f32.mrb[0].mxu0 }
 0x178   :  { %v279_v48 = vpop.f32.mrb[1].mxu0  ;;  %v146_v49 = vsel %vm34_vm1, %v141_v47, -inf }
 0x179   :  { %147 = vmax.xlane.f32.xlu0 %v146_v49 }
 0x18f   :  { %180 = vperm.xlu0 %298, %v178_v45  }
 0x206   :  { %v148_v51 = vpop.xlane.xlu0 %147 }
 0x207   :  { %v149_v53 = vsub.f32 %v141_v47, %v148_v51  ;;  %v192_v0 = vsub.f32 0.0, %v148_v51 }
 0x209   :  { %v150_v54 = vmul.f32 1.442695, %v149_v53  ;;  %v193_v1 = vmul.f32 1.442695, %v192_v0 }
 0x20b   :  { %303 = vpow2.f32 %v150_v54 }
 0x20c   :  { %305 = vpow2.f32 %v193_v1 }
 0x20e   :  { %v181_v59 = vpop.permute.xlu0 %180 }
 0x20f   :  { %vm182_vm8 = vcmp.eq.s32.totalorder %v181_v59, 1 }
 0x210   :  { %vm183_vm10 = vmand %vm182_vm8, %vm177_vm7 }
 0x211   :  { %vm184_vm11 = vmor %vm175_vm9, %vm183_vm10 }
 0x215   :  { %v304_v60 = vpop.eup %303 }
 0x216   :  { %v189_v61 = vsel %vm34_vm1, %v304_v60, 0.0  ;;  %v185_v62 = vsel %vm184_vm11, %v304_v60, 0.0  ;;  %v306_v2 = vpop.eup %305 }
 0x217   :  { %190 = vadd.xlane.f32.xlu1 %v189_v61  ;;  %v186_v63 = vsel %vm34_vm1, %v185_v62, 0.0  ;;  %v195_v3 = vmul.f32 1e-08, %v306_v2 }
 0x21b   :  { %187 = vadd.xlane.f32.xlu1 %v186_v63 }
 0x2a4   :  { %v191_v4 = vpop.xlane.xlu1 %190 }
 0x2a5   :  { %v196_v5 = vadd.f32 %v195_v3, %v191_v4 }
 0x2a7   :  { %307 = vlog2.f32 %v196_v5 }
 0x2a8   :  { %v188_v6 = vpop.xlane.xlu1 %187 }
 0x2a9   :  { %vm198_vm13 = vcmp.gt.f32.partialorder %v188_v6, 0.0  ;;  %309 = vlog2.f32 %v188_v6 }
 0x2aa   :  { %v263_v7 = vsel %vm198_vm13, 1.0, %v327_v27 }
 0x2ab   :  { %v224_v8 = vsel %vm207_vm12, %v263_v7, 0.0 }
 0x2ac   :  { %225 = vadd.xlane.f32.xlu0 %v224_v8 }
 0x2b1   :  { %v308_v9 = vpop.eup %307 }
 0x2b2   :  { %v201_v11 = vmul.f32 0.6931472, %v308_v9 }
 0x2b3   :  { %v310_v10 = vpop.eup %309 }
 0x2b4   :  { %v203_v12 = vmul.f32 0.6931472, %v310_v10 }
 0x2b6   :  { %v204_v13 = vsub.f32 %v201_v11, %v203_v12 }
 0x2b8   :  { %v206_v14 = vsel %vm198_vm13, %v204_v13, 0.0 }
 0x2b9   :  { %v208_v15 = vsel %vm207_vm12, %v206_v14, 0.0 }
 0x2ba   :  { %209 = vadd.xlane.f32.xlu1 %v208_v15 }
 0x339   :  { %v226_v16 = vpop.xlane.xlu0 %225 }
 0x33a   :  { %v227_v17 = vrot.slane %v226_v16, 4 }
 0x33c   :  { %v228_v18 = vadd.f32 %v227_v17, %v226_v16 }
 0x33e   :  { %v229_v19 = vrot.slane %v228_v18, 2 }
 0x340   :  { %v230_v23 = vadd.f32 %v229_v19, %v228_v18 }
 0x342   :  { %v231_v26 = vrot.slane %v230_v23, 1 }
 0x344   :  { %v232_v29 = vadd.f32 %v231_v26, %v230_v23 }
 0x347   :  { %v210_v20 = vpop.xlane.xlu1 %209 }
 0x348   :  { %v211_v21 = vrot.slane %v210_v20, 4 }
 0x34a   :  { %v212_v22 = vadd.f32 %v211_v21, %v210_v20 }
 0x34c   :  { %v213_v24 = vrot.slane %v212_v22, 2 }
 0x34e   :  { %v214_v25 = vadd.f32 %v213_v24, %v212_v22 }
 0x350   :  { %v215_v27 = vrot.slane %v214_v25, 1 }
 0x352   :  { %v216_v28 = vadd.f32 %v215_v27, %v214_v25 }
 0x354   :  { %286 = vpush %v216_v28 }
 0x355   :  { %288 = vpush %v232_v29 }
 0x385   :  { %s287_s3 = spop %286 }
 0x386   :  { %s289_s26 = spop %288 }
 0x387   :  { %v242_v30 = vstv %s289_s26 }
 0x388   :  { %311 = vrcp.f32 %v242_v30 }
 0x392   :  { %v312_v31 = vpop.eup %311 }
 0x393   :  { %290 = vpush %v312_v31 }
 0x3c4   :  { %s291_s27 = spop %290 }
 0x3c5   :  { %s245_s28 = smul.f32 %s291_s27, %s287_s3 }
 0x3c7   :  { %247 = sst [smem:[#allocation5]] %s245_s28 }
 0x3c8   :  { %322 = shalt.err (!%p319_p2)
}
 0x3c9   :  { %s329_s10 = smov [#allocation5]  }
 0x3ca   :  { %255 = dma.smem_to_hbm %s329_s10, 16, %s407_s4, [#allocation6]  }
 0x3cb   :  { %323 = dma.done.wait [#allocation6], 16  }
 0x3cc   :  { %324 = vsyncadd [#allocation6], 4294967280 }
 0x3cd   :  { %259 = sfence }
 0x3ce   :  { %260 = vsyncpa [#allocation6], 1 }

</bundles_post_ra>
